<compile_context>
chip_gen: v7x
topology: tpu7x:2x2x1
jax: 0.10.0
libtpu: 0.0.40
codegen_flags: <defaults>
</compile_context>

<pallas_src>
import functools

import jax
import jax.numpy as jnp
from jax.experimental import pallas as pl
from jax.experimental.pallas import tpu as pltpu


# ----------------------------- kernel body ---------------------------------


def _rope_kernel(cos_ref, ssin_ref, q_ref, k_ref, qo_ref, ko_ref):
    """One (bh_tile, s_tile, D) block of q and of k per grid step.

    cos_ref:   (s_tile, D) f32  cosine table tile
    ssin_ref:  (s_tile, D) f32  sign-folded sine table tile: cat(-sin_h, sin_h)
    q_ref/k_ref:    (bh_tile, s_tile, D) input blocks
    qo_ref/ko_ref:  (bh_tile, s_tile, D) output blocks
    """
    half = q_ref.shape[-1] // 2
    cos = cos_ref[...][None, :, :]      # (1, s_tile, D), broadcast over bh_tile
    ssin = ssin_ref[...][None, :, :]    # (1, s_tile, D)

    def apply(x_ref, o_ref):
        x = x_ref[...].astype(jnp.float32)
        # roll(x, D/2) == cat(x2, x1); the minus sign of the first half lives
        # in the precomputed signed-sin table, so this is exactly
        # x * cos + rotate_half(x) * sin.
        rolled = pltpu.roll(x, shift=half, axis=x.ndim - 1)
        o_ref[...] = (x * cos + rolled * ssin).astype(o_ref.dtype)

    apply(q_ref, qo_ref)
    apply(k_ref, ko_ref)


# --------------------------- tiling heuristics ------------------------------


def _round_up(x, m):
    return ((x + m - 1) // m) * m


def _vmem_capacity_bytes():
    """Per-core VMEM capacity; fall back to the smallest (v7x, 64 MiB)."""
    try:
        return int(pltpu.get_tpu_info().vmem_capacity_bytes)
    except Exception:
        return 64 << 20


def _choose_tiles(bh, s, d, itemsize, budget_bytes):
    """Pick (bh_tile, s_tile) so that the double-buffered working set
    (4 q/k streams x 2 buffers + 2 table streams x 2 buffers) fits the budget.
    """
    def tbl_bytes(st):                    # cos + ssin, f32, double-buffered
        return 4 * st * d * 4

    def blk_bytes(bt, st):                # q_in, k_in, q_out, k_out, x2 buffers
        return 8 * bt * st * d * itemsize

    # S tile: start with the full sequence, halve (keeping a multiple of 8,
    # the sublane granularity) until a single-row block fits the budget.
    s_tile = s
    while s_tile > 8 and blk_bytes(1, s_tile) + tbl_bytes(s_tile) > budget_bytes:
        s_tile = max(8, _round_up(s_tile // 2, 8))
    s_tile = min(s_tile, s)

    # BH tile: as large as the remaining budget allows.
    cap = (budget_bytes - tbl_bytes(s_tile)) // (8 * s_tile * d * itemsize)
    cap = max(1, min(int(cap), bh))

    # Prefer an exact divisor of bh close to the cap (no ragged edge block);
    # otherwise just take the cap and let pl.cdiv handle the masked remainder.
    best_div = 1
    for t in range(1, cap + 1):
        if bh % t == 0:
            best_div = t
    bh_tile = best_div if best_div * 2 >= cap else cap
    return bh_tile, s_tile


# ------------------------------ table cache ---------------------------------


@functools.lru_cache(maxsize=64)
def _rope_tables(seq_len, dim):
    """cos and sign-folded sin tables, cached per (seq_len, dim) like the
    module's _cos_cached / _sin_cached buffers."""
    inv_freq = 1.0 / (10000.0 ** (jnp.arange(0, dim, 2, dtype=jnp.float32) / dim))
    t = jnp.arange(seq_len, dtype=jnp.float32)
    freqs = t[:, None] * inv_freq[None, :]                  # (S, D/2)
    cos = jnp.concatenate([jnp.cos(freqs)] * 2, axis=-1)    # (S, D)
    sin_h = jnp.sin(freqs)
    ssin = jnp.concatenate([-sin_h, sin_h], axis=-1)        # (S, D) sign-folded
    return cos, ssin


# -------------------------------- wrapper ------------------------------------


def rotary_embedding_forward(q, k):
    """q, k: (B, H, S, D) with D even. Returns (q_rope, k_rope), same shape/dtype."""
    B, H, S, D = q.shape
    assert k.shape == (B, H, S, D)
    assert D % 2 == 0
    assert q.dtype == k.dtype, "q and k must share a dtype for VMEM sizing"

    cos, ssin = _rope_tables(S, D)

    BH = B * H
    qf = q.reshape(BH, S, D)
    kf = k.reshape(BH, S, D)

    itemsize = jnp.dtype(q.dtype).itemsize
    capacity = _vmem_capacity_bytes()
    budget = int(0.70 * capacity)                 # ~45 MiB on v7x, ~90 MiB on v5e/v6e
    bh_tile, s_tile = _choose_tiles(BH, S, D, itemsize, budget)

    grid = (pl.cdiv(BH, bh_tile), pl.cdiv(S, s_tile))

    resident = 8 * bh_tile * s_tile * D * itemsize + 4 * s_tile * D * 4
    vmem_limit = int(min(capacity, max(resident + (4 << 20), 32 << 20)))

    q_out, k_out = pl.pallas_call(
        _rope_kernel,
        out_shape=(jax.ShapeDtypeStruct((BH, S, D), q.dtype),
                   jax.ShapeDtypeStruct((BH, S, D), k.dtype)),
        grid_spec=pltpu.PrefetchScalarGridSpec(
            num_scalar_prefetch=0,
            grid=grid,
            in_specs=[
                pl.BlockSpec((s_tile, D), lambda i, s: (s, 0)),            # cos
                pl.BlockSpec((s_tile, D), lambda i, s: (s, 0)),            # signed sin
                pl.BlockSpec((bh_tile, s_tile, D), lambda i, s: (i, s, 0)),  # q tile
                pl.BlockSpec((bh_tile, s_tile, D), lambda i, s: (i, s, 0)),  # k tile
            ],
            out_specs=[
                pl.BlockSpec((bh_tile, s_tile, D), lambda i, s: (i, s, 0)),
                pl.BlockSpec((bh_tile, s_tile, D), lambda i, s: (i, s, 0)),
            ],
        ),
        compiler_params=pltpu.CompilerParams(
            dimension_semantics=("parallel", "parallel"),
            vmem_limit_bytes=vmem_limit),
    )(cos, ssin, qf, kf)

    return q_out.reshape(B, H, S, D), k_out.reshape(B, H, S, D)


# ------------------------------- reference -----------------------------------


def reference_rope(q, k):
    """Pure-JAX port of the PyTorch module (source of truth for the check)."""
    B, H, S, D = q.shape
    inv_freq = 1.0 / (10000.0 ** (jnp.arange(0, D, 2, dtype=jnp.float32) / D))
    t = jnp.arange(S, dtype=jnp.float32)
    freqs = jnp.outer(t, inv_freq)
    emb = jnp.concatenate([freqs, freqs], axis=-1)
    cos = jnp.cos(emb)[None, None]
    sin = jnp.sin(emb)[None, None]

    def rotate_half(x):
        x1, x2 = jnp.split(x, 2, axis=-1)
        return jnp.concatenate([-x2, x1], axis=-1)

    q_out = (q * cos + rotate_half(q) * sin).astype(q.dtype)
    k_out = (k * cos + rotate_half(k) * sin).astype(k.dtype)
    return q_out, k_out


if __name__ == "__main__":
    # Small, deterministic configuration: (batch, heads, seq, head_dim).
    batch, heads, seq, dim = 2, 4, 32, 128

    key = jax.random.PRNGKey(0)
    k_q, k_k = jax.random.split(key)
    q = jax.random.normal(k_q, (batch, heads, seq, dim), dtype=jnp.float32)
    k = jax.random.normal(k_k, (batch, heads, seq, dim), dtype=jnp.float32)

    q_out, k_out = rotary_embedding_forward(q, k)
    q_out = jax.block_until_ready(q_out)
    k_out = jax.block_until_ready(k_out)

    q_ref, k_ref = reference_rope(q, k)
    assert q_out.shape == (batch, heads, seq, dim)
    assert k_out.shape == (batch, heads, seq, dim)
    assert jnp.allclose(q_out, q_ref, atol=1e-5, rtol=1e-5), "q mismatch vs reference"
    assert jnp.allclose(k_out, k_ref, atol=1e-5, rtol=1e-5), "k mismatch vs reference"

    print("KERNEL_OK")
</pallas_src>

<mosaic_0001>
module attributes {stable_mosaic.version = 11 : i64} {
  func.func @_rope_kernel(%arg0: i32, %arg1: i32, %arg2: memref<32x128xf32, #tpu.memory_space<vmem>>, %arg3: memref<32x128xf32, #tpu.memory_space<vmem>>, %arg4: memref<8x32x128xf32, #tpu.memory_space<vmem>>, %arg5: memref<8x32x128xf32, #tpu.memory_space<vmem>>, %arg6: memref<8x32x128xf32, #tpu.memory_space<vmem>>, %arg7: memref<8x32x128xf32, #tpu.memory_space<vmem>>) attributes {dimension_semantics = [#tpu.dimension_semantics<parallel>, #tpu.dimension_semantics<parallel>], iteration_bounds = array<i64: 1, 1>, scalar_prefetch = 0 : i64, scratch_operands = 0 : i64, tpu.core_type = #tpu.core_type<tc>, window_params = [{transform_indices = @transform_0, window_bounds = array<i64: 32, 128>}, {transform_indices = @transform_1, window_bounds = array<i64: 32, 128>}, {transform_indices = @transform_2, window_bounds = array<i64: 8, 32, 128>}, {transform_indices = @transform_3, window_bounds = array<i64: 8, 32, 128>}, {transform_indices = @transform_4, window_bounds = array<i64: 8, 32, 128>}, {transform_indices = @transform_5, window_bounds = array<i64: 8, 32, 128>}]} {
    %c0 = arith.constant 0 : index
    %c0_0 = arith.constant 0 : index
    %0 = vector.load %arg2[%c0, %c0_0] : memref<32x128xf32, #tpu.memory_space<vmem>>, vector<32x128xf32>
    %1 = vector.shape_cast %0 : vector<32x128xf32> to vector<1x32x128xf32>
    %c0_1 = arith.constant 0 : index
    %c0_2 = arith.constant 0 : index
    %2 = vector.load %arg3[%c0_1, %c0_2] : memref<32x128xf32, #tpu.memory_space<vmem>>, vector<32x128xf32>
    %3 = vector.shape_cast %2 : vector<32x128xf32> to vector<1x32x128xf32>
    %c0_3 = arith.constant 0 : index
    %c0_4 = arith.constant 0 : index
    %c0_5 = arith.constant 0 : index
    %4 = vector.load %arg4[%c0_3, %c0_4, %c0_5] : memref<8x32x128xf32, #tpu.memory_space<vmem>>, vector<8x32x128xf32>
    %c64_i32 = arith.constant 64 : i32
    %5 = tpu.dynamic_rotate %4 by %c64_i32 dim 2 : vector<8x32x128xf32>, i32 -> vector<8x32x128xf32>
    %6 = vector.broadcast %1 : vector<1x32x128xf32> to vector<8x32x128xf32>
    %7 = arith.mulf %4, %6 : vector<8x32x128xf32>
    %8 = vector.broadcast %3 : vector<1x32x128xf32> to vector<8x32x128xf32>
    %9 = arith.mulf %5, %8 : vector<8x32x128xf32>
    %10 = arith.addf %7, %9 : vector<8x32x128xf32>
    %c0_6 = arith.constant 0 : index
    %c0_7 = arith.constant 0 : index
    %c0_8 = arith.constant 0 : index
    %11 = vector.load %arg6[%c0_6, %c0_7, %c0_8] : memref<8x32x128xf32, #tpu.memory_space<vmem>>, vector<8x32x128xf32>
    tpu.vector_store %arg6[%c0_6, %c0_7, %c0_8], %10 {strides = array<i32>} : memref<8x32x128xf32, #tpu.memory_space<vmem>>, vector<8x32x128xf32>,
    %c0_9 = arith.constant 0 : index
    %c0_10 = arith.constant 0 : index
    %c0_11 = arith.constant 0 : index
    %12 = vector.load %arg5[%c0_9, %c0_10, %c0_11] : memref<8x32x128xf32, #tpu.memory_space<vmem>>, vector<8x32x128xf32>
    %c64_i32_12 = arith.constant 64 : i32
    %13 = tpu.dynamic_rotate %12 by %c64_i32_12 dim 2 : vector<8x32x128xf32>, i32 -> vector<8x32x128xf32>
    %14 = vector.broadcast %1 : vector<1x32x128xf32> to vector<8x32x128xf32>
    %15 = arith.mulf %12, %14 : vector<8x32x128xf32>
    %16 = vector.broadcast %3 : vector<1x32x128xf32> to vector<8x32x128xf32>
    %17 = arith.mulf %13, %16 : vector<8x32x128xf32>
    %18 = arith.addf %15, %17 : vector<8x32x128xf32>
    %c0_13 = arith.constant 0 : index
    %c0_14 = arith.constant 0 : index
    %c0_15 = arith.constant 0 : index
    %19 = vector.load %arg7[%c0_13, %c0_14, %c0_15] : memref<8x32x128xf32, #tpu.memory_space<vmem>>, vector<8x32x128xf32>
    tpu.vector_store %arg7[%c0_13, %c0_14, %c0_15], %18 {strides = array<i32>} : memref<8x32x128xf32, #tpu.memory_space<vmem>>, vector<8x32x128xf32>,
    return
  }
  func.func @transform_0(%arg0: i32, %arg1: i32) -> (i32, i32) {
    %c0_i32 = arith.constant 0 : i32
    %c0_i32_0 = arith.constant 0 : i32
    return %arg1, %c0_i32 : i32, i32
  }
  func.func @transform_1(%arg0: i32, %arg1: i32) -> (i32, i32) {
    %c0_i32 = arith.constant 0 : i32
    %c0_i32_0 = arith.constant 0 : i32
    return %arg1, %c0_i32 : i32, i32
  }
  func.func @transform_2(%arg0: i32, %arg1: i32) -> (i32, i32, i32) {
    %c0_i32 = arith.constant 0 : i32
    %c0_i32_0 = arith.constant 0 : i32
    return %arg0, %arg1, %c0_i32 : i32, i32, i32
  }
  func.func @transform_3(%arg0: i32, %arg1: i32) -> (i32, i32, i32) {
    %c0_i32 = arith.constant 0 : i32
    %c0_i32_0 = arith.constant 0 : i32
    return %arg0, %arg1, %c0_i32 : i32, i32, i32
  }
  func.func @transform_4(%arg0: i32, %arg1: i32) -> (i32, i32, i32) {
    %c0_i32 = arith.constant 0 : i32
    %c0_i32_0 = arith.constant 0 : i32
    return %arg0, %arg1, %c0_i32 : i32, i32, i32
  }
  func.func @transform_5(%arg0: i32, %arg1: i32) -> (i32, i32, i32) {
    %c0_i32 = arith.constant 0 : i32
    %c0_i32_0 = arith.constant 0 : i32
    return %arg0, %arg1, %c0_i32 : i32, i32, i32
  }
}

</mosaic_0001>

<bundles_post_ra>
// kernel: tpu_custom_call.1
= control target key start
LH: loop header
LB: loop body
LE: loop exit
PB: predicated region body
PF: predicated region fallthrough
CT: control target
= control target key end

     0   :  { %11 = vsyncpa [#allocation3], 0  ;;  %s1326_s0 = inlined_call_operand.hbm [shape: f32[32,128], index: 0, kind: input, shape index: {}]   ;;  %s1327_s1 = inlined_call_operand.hbm [shape: f32[32,128], index: 1, kind: input, shape index: {}]   ;;  %s1328_s2 = inlined_call_operand.hbm [shape: f32[8,32,128], index: 2, kind: input, shape index: {}]   ;;  %s1329_s3 = inlined_call_operand.hbm [shape: f32[8,32,128], index: 3, kind: input, shape index: {}]   ;;  %s1330_s4 = inlined_call_operand.hbm [shape: f32[8,32,128], index: 4, kind: output, shape index: {0}]   ;;  %s1331_s5 = inlined_call_operand.hbm [shape: f32[8,32,128], index: 5, kind: output, shape index: {1}]  }
   0x1   :  { %12 = vsyncpa [#allocation6], 0 }
   0x2   :  { %13 = vsyncpa [#allocation9], 0 }
   0x3   :  { %14 = vsyncpa [#allocation4], 0 }
   0x4   :  { %15 = vsyncpa [#allocation12], 0  ;;  %s718_s18 = smov [#allocation5]   ;;  %s719_s20 = smov [#allocation2]  }
   0x5   :  { %s33_s19 = sshll.u32 %s718_s18, 4  ;;  %s21_s21 = sshll.u32 %s719_s20, 4  ;;  %s34_s19 = int_to_ptr.vmem [resolvable:$true] %s33_s19  ;;  %s757_s21 = int_to_ptr.vmem [resolvable:$true] %s21_s21 }
   0x6   :  { %s576_s24 = scalar_lea.hbm %s1327_s1, 512 }
   0x7   :  { %p577_p0 = scmp.ne.s32.totalorder %s1327_s1, %s576_s24  ;;  %p580_p1 = scmp.lt.u32.totalorder %s576_s24, %s1327_s1 }
   0x9   :  { %p582_p2 = pnand %p580_p1, %p577_p0 }
   0xb   :  { %585 = shalt.err (!%p582_p2)
}
   0xc   :  { %s586_s29 = scalar_lea.vmem %s34_s19, 512  ;;  %p591_p4 = scmp.lt.s32.totalorder %s34_s19, %s34_s19 }
   0xd   :  { %p587_p3 = scmp.ne.s32.totalorder %s34_s19, %s586_s29  ;;  %p592_p5 = scmp.lt.s32.totalorder %s586_s29, %s586_s29 }
   0xf   :  { %p593_p6 = por %p592_p5, %p591_p4 }
  0x11   :  { %p594_p7 = pnand %p593_p6, %p587_p3 }
  0x13   :  { %597 = shalt.err (!%p594_p7)
}
  0x14   :  { %s720_s30 = smov 128   ;;  %s721_s6 = smov 8  }
  0x15   :  { %39 = dma.hbm_to_vmem [thread:$0]  %s1327_s1, 512, %s34_s19, [#allocation6], %s720_s30, %s720_s30, %s721_s6  }
  0x16   :  { %s598_s11 = scalar_lea.hbm %s1326_s0, 512 }
  0x17   :  { %p599_p8 = scmp.ne.s32.totalorder %s1326_s0, %s598_s11  ;;  %p602_p9 = scmp.lt.u32.totalorder %s598_s11, %s1326_s0 }
  0x19   :  { %p604_p10 = pnand %p602_p9, %p599_p8 }
  0x1b   :  { %607 = shalt.err (!%p604_p10)
}
  0x1c   :  { %s608_s16 = scalar_lea.vmem %s757_s21, 512  ;;  %p613_p12 = scmp.lt.s32.totalorder %s757_s21, %s757_s21 }
  0x1d   :  { %p609_p11 = scmp.ne.s32.totalorder %s757_s21, %s608_s16  ;;  %p614_p13 = scmp.lt.s32.totalorder %s608_s16, %s608_s16 }
  0x1f   :  { %p615_p0 = por %p614_p13, %p613_p12 }
  0x21   :  { %p616_p1 = pnand %p615_p0, %p609_p11 }
  0x23   :  { %619 = shalt.err (!%p616_p1)
}
  0x24   :  { %27 = dma.hbm_to_vmem [thread:$0]  %s1326_s0, 512, %s757_s21, [#allocation3], %s720_s30, %s720_s30, %s721_s6  }
  0x25   :  { %s722_s18 = smov [#allocation7]   ;;  %s723_s20 = smov [#allocation8]  }
  0x26   :  { %s45_s19 = sshll.u32 %s722_s18, 4  ;;  %s57_s22 = sshll.u32 %s723_s20, 4  ;;  %s46_s19 = int_to_ptr.vmem [resolvable:$true] %s45_s19  ;;  %s794_s22 = int_to_ptr.vmem [resolvable:$true] %s57_s22 }
  0x27   :  { %s620_s25 = scalar_lea.hbm %s1328_s2, 4096 }
  0x28   :  { %p621_p2 = scmp.ne.s32.totalorder %s1328_s2, %s620_s25  ;;  %p624_p3 = scmp.lt.u32.totalorder %s620_s25, %s1328_s2 }
  0x2a   :  { %p626_p4 = pnand %p624_p3, %p621_p2 }
  0x2c   :  { %629 = shalt.err (!%p626_p4)
}
  0x2d   :  { %s630_s0 = scalar_lea.vmem %s46_s19, 4096  ;;  %p635_p6 = scmp.lt.s32.totalorder %s46_s19, %s46_s19 }
  0x2e   :  { %p631_p5 = scmp.ne.s32.totalorder %s46_s19, %s630_s0  ;;  %p636_p7 = scmp.lt.s32.totalorder %s630_s0, %s630_s0 }
  0x30   :  { %p637_p8 = por %p636_p7, %p635_p6 }
  0x32   :  { %p638_p9 = pnand %p637_p8, %p631_p5 }
  0x34   :  { %641 = shalt.err (!%p638_p9)
}
  0x35   :  { %51 = dma.hbm_to_vmem [thread:$0]  %s1328_s2, 4096, %s46_s19, [#allocation6], %s720_s30, %s720_s30, %s721_s6  }
  0x36   :  { %s642_s10 = scalar_lea.hbm %s1329_s3, 4096 }
  0x37   :  { %p643_p10 = scmp.ne.s32.totalorder %s1329_s3, %s642_s10  ;;  %p646_p11 = scmp.lt.u32.totalorder %s642_s10, %s1329_s3 }
  0x39   :  { %p648_p12 = pnand %p646_p11, %p643_p10 }
  0x3b   :  { %651 = shalt.err (!%p648_p12)
}
  0x3c   :  { %s652_s15 = scalar_lea.vmem %s794_s22, 4096  ;;  %p657_p0 = scmp.lt.s32.totalorder %s794_s22, %s794_s22 }
  0x3d   :  { %p653_p13 = scmp.ne.s32.totalorder %s794_s22, %s652_s15  ;;  %p658_p1 = scmp.lt.s32.totalorder %s652_s15, %s652_s15 }
  0x3f   :  { %p659_p2 = por %p658_p1, %p657_p0 }
  0x41   :  { %p660_p3 = pnand %p659_p2, %p653_p13 }
  0x43   :  { %663 = shalt.err (!%p660_p3)
}
  0x44   :  { %63 = dma.hbm_to_vmem [thread:$0]  %s1329_s3, 4096, %s794_s22, [#allocation9], %s720_s30, %s720_s30, %s721_s6  }
  0x45   :  { %708 = dma.done.wait [#allocation3], 512  }
  0x46   :  { %709 = vsyncadd [#allocation3], 4294966784 }
  0x47   :  { %710 = dma.done.wait [#allocation6], 4608  }
  0x48   :  { %711 = vsyncadd [#allocation6], 4294962688 }
  0x49   :  { %712 = dma.done.wait [#allocation9], 4096  }
  0x4a   :  { %713 = vsyncadd [#allocation9], 4294963200  ;;  %v831_v0 = vld [vmem:[#allocation7 + $0x10] sm:$0xff]  ;;  %v833_v1 = vld [vmem:[#allocation7] sm:$0xff]  ;;  %s724_s1 = smov 64   ;;  %s725_s3 = smov [#allocation10]  }
  0x4b   :  { %120 = vrot.lane.b32.xlu1 %v831_v0, %s724_s1  ;;  %116 = vrot.lane.b32.xlu0 %v833_v1, %s724_s1  ;;  %v839_v2 = vld [vmem:[#allocation7 + $0x18] sm:$0xff]  ;;  %v841_v3 = vld [vmem:[#allocation7 + $0x8] sm:$0xff]  ;;  %v849_v5 = vld [vmem:[#allocation7 + $0x20] sm:$0xff]  ;;  %s537_s17 = sshll.u32 %s725_s3, 4  ;;  %s538_s17 = int_to_ptr.vmem [resolvable:$true] %s537_s17 }
  0x4c   :  { %v847_v4 = vld [vmem:[#allocation7 + $0x28] sm:$0xff]  ;;  %v855_v6 = vld [vmem:[#allocation7 + $0x38] sm:$0xff]  ;;  %v857_v7 = vld [vmem:[#allocation7 + $0x30] sm:$0xff]  ;;  %s664_s18 = scalar_lea.vmem %s538_s17, 4096  ;;  %p669_p5 = scmp.lt.s32.totalorder %s538_s17, %s538_s17 }
  0x4d   :  { %v859_v8 = vld [vmem:[#allocation2 + $0x10] sm:$0xff]  ;;  %v861_v9 = vld [vmem:[#allocation2] sm:$0xff]  ;;  %v863_v10 = vld [vmem:[#allocation2 + $0x18] sm:$0xff]  ;;  %p665_p4 = scmp.ne.s32.totalorder %s538_s17, %s664_s18  ;;  %p670_p6 = scmp.lt.s32.totalorder %s664_s18, %s664_s18 }
  0x4e   :  { %v865_v11 = vld [vmem:[#allocation2 + $0x8] sm:$0xff]  ;;  %v869_v13 = vld [vmem:[#allocation8] sm:$0xff]  ;;  %v871_v14 = vld [vmem:[#allocation8 + $0x18] sm:$0xff] }
  0x4f   :  { %122 = vrot.lane.b32.xlu1 %v839_v2, %s724_s1  ;;  %118 = vrot.lane.b32.xlu0 %v841_v3, %s724_s1  ;;  %v867_v12 = vld [vmem:[#allocation7 + $0x48] sm:$0xff]  ;;  %v879_v15 = vmul.f32 %v869_v13, %v861_v9  ;;  %v883_v16 = vmul.f32 %v871_v14, %v863_v10  ;;  %v310_v17 = vld [vmem:[#allocation8 + $0x10] sm:$0xff]  ;;  %v312_v19 = vld [vmem:[#allocation8 + $0x20] sm:$0xff]  ;;  %p671_p7 = por %p670_p6, %p669_p5 }
  0x50   :  { %v313_v18 = vld [vmem:[#allocation8 + $0x28] sm:$0xff]  ;;  %v885_v20 = vld [vmem:[#allocation7 + $0x40] sm:$0xff]  ;;  %v888_v21 = vmul.f32 %v310_v17, %v859_v8  ;;  %v894_v23 = vmul.f32 %v312_v19, %v861_v9  ;;  %v315_v24 = vld [vmem:[#allocation8 + $0x38] sm:$0xff] }
  0x51   :  { %v891_v22 = vmul.f32 %v313_v18, %v865_v11  ;;  %v314_v25 = vld [vmem:[#allocation8 + $0x30] sm:$0xff]  ;;  %v897_v26 = vmul.f32 %v315_v24, %v863_v10  ;;  %v906_v28 = vld [vmem:[#allocation7 + $0x58] sm:$0xff]  ;;  %v914_v30 = vld [vmem:[#allocation7 + $0x68] sm:$0xff]  ;;  %p672_p8 = pnand %p671_p7, %p665_p4 }
  0x52   :  { %v900_v27 = vmul.f32 %v314_v25, %v859_v8  ;;  %v908_v29 = vld [vmem:[#allocation7 + $0x50] sm:$0xff]  ;;  %v916_v31 = vld [vmem:[#allocation7 + $0x60] sm:$0xff]  ;;  %v922_v32 = vld [vmem:[#allocation7 + $0x78] sm:$0xff] }
  0x53   :  { %126 = vrot.lane.b32.xlu1 %v847_v4, %s724_s1  ;;  %124 = vrot.lane.b32.xlu0 %v849_v5, %s724_s1  ;;  %v924_v33 = vld [vmem:[#allocation7 + $0x70] sm:$0xff]  ;;  %v930_v34 = vld [vmem:[#allocation7 + $0x88] sm:$0xff]  ;;  %v932_v35 = vld [vmem:[#allocation7 + $0x80] sm:$0xff] }
  0x54   :  { %v938_v36 = vld [vmem:[#allocation7 + $0x98] sm:$0xff]  ;;  %v940_v37 = vld [vmem:[#allocation7 + $0x90] sm:$0xff]  ;;  %v946_v38 = vld [vmem:[#allocation7 + $0xa8] sm:$0xff] }
  0x55   :  { %v948_v39 = vld [vmem:[#allocation7 + $0xa0] sm:$0xff]  ;;  %v954_v40 = vld [vmem:[#allocation7 + $0xb8] sm:$0xff]  ;;  %v956_v41 = vld [vmem:[#allocation7 + $0xb0] sm:$0xff] }
  0x56   :  { %v962_v42 = vld [vmem:[#allocation7 + $0xc8] sm:$0xff]  ;;  %v964_v43 = vld [vmem:[#allocation7 + $0xc0] sm:$0xff]  ;;  %v970_v44 = vld [vmem:[#allocation7 + $0xd8] sm:$0xff] }
  0x57   :  { %130 = vrot.lane.b32.xlu1 %v855_v6, %s724_s1  ;;  %128 = vrot.lane.b32.xlu0 %v857_v7, %s724_s1  ;;  %v972_v45 = vld [vmem:[#allocation7 + $0xd0] sm:$0xff]  ;;  %v978_v46 = vld [vmem:[#allocation7 + $0xe8] sm:$0xff]  ;;  %v980_v47 = vld [vmem:[#allocation7 + $0xe0] sm:$0xff] }
  0x58   :  { %v986_v48 = vld [vmem:[#allocation7 + $0xf8] sm:$0xff]  ;;  %v988_v49 = vld [vmem:[#allocation7 + $0xf0] sm:$0xff]  ;;  %v994_v50 = vld [vmem:[#allocation8 + $0x8] sm:$0xff] }
  0x59   :  { %v1007_v51 = vld [vmem:[#allocation8 + $0x48] sm:$0xff]  ;;  %v1009_v52 = vld [vmem:[#allocation8 + $0x40] sm:$0xff]  ;;  %v1015_v53 = vld [vmem:[#allocation8 + $0x58] sm:$0xff] }
  0x5a   :  { %v1017_v54 = vld [vmem:[#allocation8 + $0x50] sm:$0xff]  ;;  %v1023_v55 = vld [vmem:[#allocation8 + $0x68] sm:$0xff]  ;;  %v1025_v56 = vld [vmem:[#allocation8 + $0x60] sm:$0xff] }
  0x5b   :  { %134 = vrot.lane.b32.xlu1 %v867_v12, %s724_s1  ;;  %132 = vrot.lane.b32.xlu0 %v885_v20, %s724_s1  ;;  %1350 = vst [vmem:[#allocation18_spill] sm:$0xff] %v1023_v55  ;;  %1351 = vst [vmem:[#allocation19_spill] sm:$0xff] %v1025_v56  ;;  %v1031_v57 = vld [vmem:[#allocation8 + $0x78] sm:$0xff]  ;;  %v1033_v58 = vld [vmem:[#allocation8 + $0x70] sm:$0xff] }
  0x5c   :  { %1352 = vst [vmem:[#allocation20_spill] sm:$0xff] %v1031_v57  ;;  %1353 = vst [vmem:[#allocation21_spill] sm:$0xff] %v1033_v58  ;;  %v1039_v59 = vld [vmem:[#allocation8 + $0x88] sm:$0xff]  ;;  %v1041_v60 = vld [vmem:[#allocation8 + $0x80] sm:$0xff] }
  0x5d   :  { %1354 = vst [vmem:[#allocation22_spill] sm:$0xff] %v1039_v59  ;;  %1355 = vst [vmem:[#allocation23_spill] sm:$0xff] %v1041_v60  ;;  %v1047_v61 = vld [vmem:[#allocation8 + $0x98] sm:$0xff]  ;;  %v1049_v62 = vld [vmem:[#allocation8 + $0x90] sm:$0xff] }
  0x5e   :  { %1356 = vst [vmem:[#allocation24_spill] sm:$0xff] %v1047_v61  ;;  %1357 = vst [vmem:[#allocation25_spill] sm:$0xff] %v1049_v62  ;;  %v1055_v63 = vld [vmem:[#allocation8 + $0xa8] sm:$0xff] }
  0x5f   :  { %138 = vrot.lane.b32.xlu1 %v906_v28, %s724_s1  ;;  %136 = vrot.lane.b32.xlu0 %v908_v29, %s724_s1  ;;  %1358 = vst [vmem:[#allocation26_spill] sm:$0xff] %v1055_v63 }
  0x63   :  { %142 = vrot.lane.b32.xlu1 %v914_v30, %s724_s1  ;;  %140 = vrot.lane.b32.xlu0 %v916_v31, %s724_s1 }
  0x67   :  { %146 = vrot.lane.b32.xlu1 %v922_v32, %s724_s1  ;;  %144 = vrot.lane.b32.xlu0 %v924_v33, %s724_s1 }
  0x6b   :  { %150 = vrot.lane.b32.xlu1 %v930_v34, %s724_s1  ;;  %148 = vrot.lane.b32.xlu0 %v932_v35, %s724_s1 }
  0x6f   :  { %154 = vrot.lane.b32.xlu1 %v938_v36, %s724_s1  ;;  %152 = vrot.lane.b32.xlu0 %v940_v37, %s724_s1 }
  0x73   :  { %158 = vrot.lane.b32.xlu1 %v946_v38, %s724_s1  ;;  %156 = vrot.lane.b32.xlu0 %v948_v39, %s724_s1 }
  0x77   :  { %162 = vrot.lane.b32.xlu1 %v954_v40, %s724_s1  ;;  %160 = vrot.lane.b32.xlu0 %v956_v41, %s724_s1 }
  0x7b   :  { %166 = vrot.lane.b32.xlu1 %v962_v42, %s724_s1  ;;  %164 = vrot.lane.b32.xlu0 %v964_v43, %s724_s1 }
  0x7f   :  { %170 = vrot.lane.b32.xlu1 %v970_v44, %s724_s1  ;;  %168 = vrot.lane.b32.xlu0 %v972_v45, %s724_s1 }
  0x83   :  { %174 = vrot.lane.b32.xlu1 %v978_v46, %s724_s1  ;;  %172 = vrot.lane.b32.xlu0 %v980_v47, %s724_s1 }
  0x87   :  { %178 = vrot.lane.b32.xlu1 %v986_v48, %s724_s1  ;;  %176 = vrot.lane.b32.xlu0 %v988_v49, %s724_s1 }
  0x8b   :  { %342 = vrot.lane.b32.xlu1 %v994_v50, %s724_s1  ;;  %340 = vrot.lane.b32.xlu0 %v869_v13, %s724_s1  ;;  %v1057_v13 = vld [vmem:[#allocation8 + $0xa0] sm:$0xff] }
  0x8c   :  { %1359 = vst [vmem:[#allocation27_spill] sm:$0xff] %v1057_v13 }
  0x8f   :  { %346 = vrot.lane.b32.xlu1 %v871_v14, %s724_s1  ;;  %344 = vrot.lane.b32.xlu0 %v310_v17, %s724_s1  ;;  %v1063_v14 = vld [vmem:[#allocation8 + $0xb8] sm:$0xff]  ;;  %v1065_v17 = vld [vmem:[#allocation8 + $0xb0] sm:$0xff] }
  0x90   :  { %1360 = vst [vmem:[#allocation28_spill] sm:$0xff] %v1063_v14  ;;  %1361 = vst [vmem:[#allocation29_spill] sm:$0xff] %v1065_v17 }
  0x93   :  { %350 = vrot.lane.b32.xlu1 %v313_v18, %s724_s1  ;;  %348 = vrot.lane.b32.xlu0 %v312_v19, %s724_s1  ;;  %v1071_v18 = vld [vmem:[#allocation8 + $0xc8] sm:$0xff]  ;;  %v1073_v19 = vld [vmem:[#allocation8 + $0xc0] sm:$0xff] }
  0x94   :  { %1362 = vst [vmem:[#allocation30_spill] sm:$0xff] %v1071_v18  ;;  %1363 = vst [vmem:[#allocation31_spill] sm:$0xff] %v1073_v19 }
  0x97   :  { %354 = vrot.lane.b32.xlu1 %v315_v24, %s724_s1  ;;  %352 = vrot.lane.b32.xlu0 %v314_v25, %s724_s1  ;;  %v1079_v24 = vld [vmem:[#allocation5 + $0x10] sm:$0xff]  ;;  %v1081_v25 = vld [vmem:[#allocation5] sm:$0xff] }
  0x9b   :  { %358 = vrot.lane.b32.xlu1 %v1007_v51, %s724_s1  ;;  %356 = vrot.lane.b32.xlu0 %v1009_v52, %s724_s1 }
  0x9f   :  { %362 = vrot.lane.b32.xlu1 %v1015_v53, %s724_s1  ;;  %360 = vrot.lane.b32.xlu0 %v1017_v54, %s724_s1 }
  0xa3   :  { %366 = vrot.lane.b32.xlu1 %v1023_v55, %s724_s1  ;;  %364 = vrot.lane.b32.xlu0 %v1025_v56, %s724_s1 }
  0xa7   :  { %370 = vrot.lane.b32.xlu1 %v1031_v57, %s724_s1  ;;  %368 = vrot.lane.b32.xlu0 %v1033_v58, %s724_s1  ;;  %v1105_v57 = vld [vmem:[#allocation8 + $0xe8] sm:$0xff] }
  0xab   :  { %374 = vrot.lane.b32.xlu1 %v1039_v59, %s724_s1  ;;  %372 = vrot.lane.b32.xlu0 %v1041_v60, %s724_s1  ;;  %v1099_v60 = vld [vmem:[#allocation5 + $0x8] sm:$0xff]  ;;  %v181_v59 = vmul.f32 %v841_v3, %v865_v11  ;;  %v184_v3 = vmul.f32 %v849_v5, %v861_v9  ;;  %v186_v5 = vmul.f32 %v857_v7, %v859_v8 }
  0xaf   :  { %378 = vrot.lane.b32.xlu1 %v1047_v61, %s724_s1  ;;  %376 = vrot.lane.b32.xlu0 %v1049_v62, %s724_s1 }
  0xb3   :  { %382 = vrot.lane.b32.xlu1 %v1055_v63, %s724_s1  ;;  %380 = vrot.lane.b32.xlu0 %v1057_v13, %s724_s1  ;;  %v1087_v13 = vld [vmem:[#allocation8 + $0xd8] sm:$0xff]  ;;  %v1089_v63 = vld [vmem:[#allocation8 + $0xd0] sm:$0xff] }
  0xb4   :  { %1364 = vst [vmem:[#allocation32_spill] sm:$0xff] %v1087_v13  ;;  %1365 = vst [vmem:[#allocation33_spill] sm:$0xff] %v1089_v63 }
  0xb7   :  { %386 = vrot.lane.b32.xlu1 %v1063_v14, %s724_s1  ;;  %384 = vrot.lane.b32.xlu0 %v1065_v17, %s724_s1  ;;  %v182_v14 = vmul.f32 %v831_v0, %v859_v8  ;;  %v180_v17 = vmul.f32 %v833_v1, %v861_v9  ;;  %v1097_v0 = vld [vmem:[#allocation5 + $0x18] sm:$0xff]  ;;  %v183_v1 = vmul.f32 %v839_v2, %v863_v10 }
  0xb8   :  { %v185_v2 = vmul.f32 %v847_v4, %v865_v11  ;;  %v187_v4 = vmul.f32 %v855_v6, %v863_v10 }
  0xbb   :  { %390 = vrot.lane.b32.xlu1 %v1071_v18, %s724_s1  ;;  %388 = vrot.lane.b32.xlu0 %v1073_v19, %s724_s1 }
  0xbd   :  { %v121_v62 = vpop.permute.xlu1 %120  ;;  %v117_v61 = vpop.permute.xlu0 %116 }
  0xbe   :  { %v214_v18 = vmul.f32 %v121_v62, %v1079_v24  ;;  %v212_v19 = vmul.f32 %v117_v61, %v1081_v25  ;;  %v1107_v61 = vld [vmem:[#allocation8 + $0xe0] sm:$0xff] }
  0xbf   :  { %394 = vrot.lane.b32.xlu1 %v1087_v13, %s724_s1  ;;  %392 = vrot.lane.b32.xlu0 %v1089_v63, %s724_s1 }
  0xc0   :  { %v246_v58 = vadd.f32 %v214_v18, %v182_v14  ;;  %v244_v62 = vadd.f32 %v212_v19, %v180_v17  ;;  %v1121_v18 = vld [vmem:[#allocation8 + $0xf0] sm:$0xff] }
  0xc1   :  { %v123_v13 = vpop.permute.xlu1 %122  ;;  %v119_v56 = vpop.permute.xlu0 %118  ;;  %1367 = vst [vmem:[#allocation35_spill] sm:$0xff] %v1121_v18 }
  0xc2   :  { %278 = vst [vmem:[#allocation10 + $0x10] sm:$0xff] %v246_v58  ;;  %276 = vst [vmem:[#allocation10] sm:$0xff] %v244_v62  ;;  %v215_v63 = vmul.f32 %v123_v13, %v1097_v0  ;;  %v213_v55 = vmul.f32 %v119_v56, %v1099_v60  ;;  %v1119_v58 = vld [vmem:[#allocation8 + $0xf8] sm:$0xff] }
  0xc3   :  { %398 = vrot.lane.b32.xlu1 %v1105_v57, %s724_s1  ;;  %396 = vrot.lane.b32.xlu0 %v1107_v61, %s724_s1  ;;  %1366 = vst [vmem:[#allocation34_spill] sm:$0xff] %v1119_v58 }
  0xc4   :  { %v247_v14 = vadd.f32 %v215_v63, %v183_v1  ;;  %v245_v17 = vadd.f32 %v213_v55, %v181_v59 }
  0xc5   :  { %v127_v13 = vpop.permute.xlu1 %126  ;;  %v125_v56 = vpop.permute.xlu0 %124 }
  0xc6   :  { %279 = vst [vmem:[#allocation10 + $0x18] sm:$0xff] %v247_v14  ;;  %277 = vst [vmem:[#allocation10 + $0x8] sm:$0xff] %v245_v17  ;;  %v217_v19 = vmul.f32 %v127_v13, %v1099_v60  ;;  %v216_v62 = vmul.f32 %v125_v56, %v1081_v25  ;;  %v189_v13 = vmul.f32 %v867_v12, %v865_v11 }
  0xc7   :  { %402 = vrot.lane.b32.xlu1 %v1119_v58, %s724_s1  ;;  %400 = vrot.lane.b32.xlu0 %v1121_v18, %s724_s1  ;;  %v188_v56 = vmul.f32 %v885_v20, %v861_v9 }
  0xc8   :  { %v249_v55 = vadd.f32 %v217_v19, %v185_v2  ;;  %v248_v59 = vadd.f32 %v216_v62, %v184_v3  ;;  %v191_v19 = vmul.f32 %v906_v28, %v863_v10  ;;  %v190_v62 = vmul.f32 %v908_v29, %v859_v8 }
  0xc9   :  { %v131_v63 = vpop.permute.xlu1 %130  ;;  %v129_v1 = vpop.permute.xlu0 %128 }
  0xca   :  { %281 = vst [vmem:[#allocation10 + $0x28] sm:$0xff] %v249_v55  ;;  %280 = vst [vmem:[#allocation10 + $0x20] sm:$0xff] %v248_v59  ;;  %v219_v14 = vmul.f32 %v131_v63, %v1097_v0  ;;  %v218_v17 = vmul.f32 %v129_v1, %v1079_v24 }
  0xcc   :  { %v251_v6 = vadd.f32 %v219_v14, %v187_v4  ;;  %v250_v18 = vadd.f32 %v218_v17, %v186_v5  ;;  %v192_v5 = vmul.f32 %v916_v31, %v861_v9 }
  0xcd   :  { %v135_v58 = vpop.permute.xlu1 %134  ;;  %v133_v7 = vpop.permute.xlu0 %132 }
  0xce   :  { %283 = vst [vmem:[#allocation10 + $0x38] sm:$0xff] %v251_v6  ;;  %282 = vst [vmem:[#allocation10 + $0x30] sm:$0xff] %v250_v18  ;;  %v221_v2 = vmul.f32 %v135_v58, %v1099_v60  ;;  %v220_v3 = vmul.f32 %v133_v7, %v1081_v25  ;;  %v193_v58 = vmul.f32 %v914_v30, %v865_v11 }
  0xd0   :  { %v253_v12 = vadd.f32 %v221_v2, %v189_v13  ;;  %v252_v55 = vadd.f32 %v220_v3, %v188_v56  ;;  %v195_v13 = vmul.f32 %v922_v32, %v863_v10  ;;  %v194_v56 = vmul.f32 %v924_v33, %v859_v8 }
  0xd1   :  { %v139_v59 = vpop.permute.xlu1 %138  ;;  %v137_v20 = vpop.permute.xlu0 %136 }
  0xd2   :  { %285 = vst [vmem:[#allocation10 + $0x48] sm:$0xff] %v253_v12  ;;  %284 = vst [vmem:[#allocation10 + $0x40] sm:$0xff] %v252_v55  ;;  %v223_v4 = vmul.f32 %v139_v59, %v1097_v0  ;;  %v222_v18 = vmul.f32 %v137_v20, %v1079_v24 }
  0xd4   :  { %v255_v28 = vadd.f32 %v223_v4, %v191_v19  ;;  %v254_v63 = vadd.f32 %v222_v18, %v190_v62  ;;  %v197_v19 = vmul.f32 %v930_v34, %v865_v11  ;;  %v196_v62 = vmul.f32 %v932_v35, %v861_v9 }
  0xd5   :  { %v143_v1 = vpop.permute.xlu1 %142  ;;  %v141_v29 = vpop.permute.xlu0 %140  ;;  %v199_v4 = vmul.f32 %v938_v36, %v863_v10  ;;  %v198_v18 = vmul.f32 %v940_v37, %v859_v8 }
  0xd6   :  { %287 = vst [vmem:[#allocation10 + $0x58] sm:$0xff] %v255_v28  ;;  %286 = vst [vmem:[#allocation10 + $0x50] sm:$0xff] %v254_v63  ;;  %v225_v14 = vmul.f32 %v143_v1, %v1099_v60  ;;  %v224_v17 = vmul.f32 %v141_v29, %v1081_v25  ;;  %v201_v1 = vmul.f32 %v946_v38, %v865_v11 }
  0xd7   :  { %v200_v29 = vmul.f32 %v948_v39, %v861_v9 }
  0xd8   :  { %v257_v30 = vadd.f32 %v225_v14, %v193_v58  ;;  %v256_v6 = vadd.f32 %v224_v17, %v192_v5 }
  0xd9   :  { %v147_v7 = vpop.permute.xlu1 %146  ;;  %v145_v31 = vpop.permute.xlu0 %144 }
  0xda   :  { %289 = vst [vmem:[#allocation10 + $0x68] sm:$0xff] %v257_v30  ;;  %288 = vst [vmem:[#allocation10 + $0x60] sm:$0xff] %v256_v6  ;;  %v227_v2 = vmul.f32 %v147_v7, %v1097_v0  ;;  %v226_v3 = vmul.f32 %v145_v31, %v1079_v24  ;;  %v203_v30 = vmul.f32 %v954_v40, %v863_v10 }
  0xdb   :  { %v202_v6 = vmul.f32 %v956_v41, %v859_v8 }
  0xdc   :  { %v259_v32 = vadd.f32 %v227_v2, %v195_v13  ;;  %v258_v12 = vadd.f32 %v226_v3, %v194_v56 }
  0xdd   :  { %v151_v55 = vpop.permute.xlu1 %150  ;;  %v149_v33 = vpop.permute.xlu0 %148 }
  0xde   :  { %291 = vst [vmem:[#allocation10 + $0x78] sm:$0xff] %v259_v32  ;;  %290 = vst [vmem:[#allocation10 + $0x70] sm:$0xff] %v258_v12  ;;  %v229_v59 = vmul.f32 %v151_v55, %v1099_v60  ;;  %v228_v20 = vmul.f32 %v149_v33, %v1081_v25 }
  0xe0   :  { %v261_v34 = vadd.f32 %v229_v59, %v197_v19  ;;  %v260_v58 = vadd.f32 %v228_v20, %v196_v62  ;;  %v205_v19 = vmul.f32 %v962_v42, %v865_v11  ;;  %v204_v62 = vmul.f32 %v964_v43, %v861_v9 }
  0xe1   :  { %v155_v5 = vpop.permute.xlu1 %154  ;;  %v153_v35 = vpop.permute.xlu0 %152  ;;  %v207_v59 = vmul.f32 %v970_v44, %v863_v10  ;;  %v206_v20 = vmul.f32 %v972_v45, %v859_v8 }
  0xe2   :  { %293 = vst [vmem:[#allocation10 + $0x88] sm:$0xff] %v261_v34  ;;  %292 = vst [vmem:[#allocation10 + $0x80] sm:$0xff] %v260_v58  ;;  %v231_v28 = vmul.f32 %v155_v5, %v1097_v0  ;;  %v230_v63 = vmul.f32 %v153_v35, %v1079_v24  ;;  %v209_v5 = vmul.f32 %v978_v46, %v865_v11 }
  0xe3   :  { %v208_v35 = vmul.f32 %v980_v47, %v861_v9 }
  0xe4   :  { %v263_v36 = vadd.f32 %v231_v28, %v199_v4  ;;  %v262_v14 = vadd.f32 %v230_v63, %v198_v18 }
  0xe5   :  { %v159_v17 = vpop.permute.xlu1 %158  ;;  %v157_v37 = vpop.permute.xlu0 %156 }
  0xe6   :  { %295 = vst [vmem:[#allocation10 + $0x98] sm:$0xff] %v263_v36  ;;  %294 = vst [vmem:[#allocation10 + $0x90] sm:$0xff] %v262_v14  ;;  %v233_v13 = vmul.f32 %v159_v17, %v1099_v60  ;;  %v232_v56 = vmul.f32 %v157_v37, %v1081_v25  ;;  %v211_v36 = vmul.f32 %v986_v48, %v863_v10 }
  0xe7   :  { %v210_v14 = vmul.f32 %v988_v49, %v859_v8 }
  0xe8   :  { %v265_v38 = vadd.f32 %v233_v13, %v201_v1  ;;  %v264_v7 = vadd.f32 %v232_v56, %v200_v29 }
  0xe9   :  { %v163_v31 = vpop.permute.xlu1 %162  ;;  %v161_v39 = vpop.permute.xlu0 %160 }
  0xea   :  { %297 = vst [vmem:[#allocation10 + $0xa8] sm:$0xff] %v265_v38  ;;  %296 = vst [vmem:[#allocation10 + $0xa0] sm:$0xff] %v264_v7  ;;  %v235_v2 = vmul.f32 %v163_v31, %v1097_v0  ;;  %v234_v3 = vmul.f32 %v161_v39, %v1079_v24 }
  0xec   :  { %v267_v40 = vadd.f32 %v235_v2, %v203_v30  ;;  %v266_v32 = vadd.f32 %v234_v3, %v202_v6  ;;  %v405_v30 = vmul.f32 %v994_v50, %v865_v11 }
  0xed   :  { %v167_v12 = vpop.permute.xlu1 %166  ;;  %v165_v41 = vpop.permute.xlu0 %164 }
  0xee   :  { %299 = vst [vmem:[#allocation10 + $0xb8] sm:$0xff] %v267_v40  ;;  %298 = vst [vmem:[#allocation10 + $0xb0] sm:$0xff] %v266_v32  ;;  %v237_v55 = vmul.f32 %v167_v12, %v1099_v60  ;;  %v236_v33 = vmul.f32 %v165_v41, %v1081_v25 }
  0xf0   :  { %v269_v42 = vadd.f32 %v237_v55, %v205_v19  ;;  %v268_v4 = vadd.f32 %v236_v33, %v204_v62 }
  0xf1   :  { %v171_v18 = vpop.permute.xlu1 %170  ;;  %v169_v43 = vpop.permute.xlu0 %168 }
  0xf2   :  { %301 = vst [vmem:[#allocation10 + $0xc8] sm:$0xff] %v269_v42  ;;  %300 = vst [vmem:[#allocation10 + $0xc0] sm:$0xff] %v268_v4  ;;  %v239_v34 = vmul.f32 %v171_v18, %v1097_v0  ;;  %v238_v58 = vmul.f32 %v169_v43, %v1079_v24 }
  0xf4   :  { %v271_v44 = vadd.f32 %v239_v34, %v207_v59  ;;  %v270_v28 = vadd.f32 %v238_v58, %v206_v20 }
  0xf5   :  { %v175_v63 = vpop.permute.xlu1 %174  ;;  %v173_v45 = vpop.permute.xlu0 %172 }
  0xf6   :  { %303 = vst [vmem:[#allocation10 + $0xd8] sm:$0xff] %v271_v44  ;;  %302 = vst [vmem:[#allocation10 + $0xd0] sm:$0xff] %v270_v28  ;;  %v241_v1 = vmul.f32 %v175_v63, %v1099_v60  ;;  %v240_v29 = vmul.f32 %v173_v45, %v1081_v25 }
  0xf8   :  { %v273_v46 = vadd.f32 %v241_v1, %v209_v5  ;;  %v272_v17 = vadd.f32 %v240_v29, %v208_v35 }
  0xf9   :  { %v179_v37 = vpop.permute.xlu1 %178  ;;  %v177_v47 = vpop.permute.xlu0 %176 }
  0xfa   :  { %305 = vst [vmem:[#allocation10 + $0xe8] sm:$0xff] %v273_v46  ;;  %304 = vst [vmem:[#allocation10 + $0xe0] sm:$0xff] %v272_v17  ;;  %v243_v13 = vmul.f32 %v179_v37, %v1097_v0  ;;  %v242_v56 = vmul.f32 %v177_v47, %v1079_v24 }
  0xfc   :  { %v275_v6 = vadd.f32 %v243_v13, %v211_v36  ;;  %v274_v48 = vadd.f32 %v242_v56, %v210_v14 }
  0xfd   :  { %v343_v38 = vpop.permute.xlu1 %342  ;;  %v341_v49 = vpop.permute.xlu0 %340 }
  0xfe   :  { %307 = vst [vmem:[#allocation10 + $0xf8] sm:$0xff] %v275_v6  ;;  %306 = vst [vmem:[#allocation10 + $0xf0] sm:$0xff] %v274_v48  ;;  %v437_v7 = vmul.f32 %v343_v38, %v1099_v60  ;;  %v436_v31 = vmul.f32 %v341_v49, %v1081_v25 }
  0xff   :  { %675 = shalt.err (!%p672_p8)
}
 0x100   :  { %s676_s22 = scalar_lea.hbm %s1330_s4, 4096 }
 0x101   :  { %p677_p9 = scmp.ne.s32.totalorder %s1330_s4, %s676_s22  ;;  %p680_p10 = scmp.lt.u32.totalorder %s676_s22, %s1330_s4 }
 0x103   :  { %p682_p11 = pnand %p680_p10, %p677_p9 }
 0x105   :  { %685 = shalt.err (!%p682_p11)
}
 0x106   :  { %543 = dma.vmem_to_hbm [thread:$0]  %s538_s17, 4096, %s1330_s4, [#allocation4], %s720_s30, %s720_s30, %s721_s6   ;;  %v469_v50 = vadd.f32 %v437_v7, %v405_v30  ;;  %v468_v39 = vadd.f32 %v436_v31, %v879_v15  ;;  %v347_v2 = vpop.permute.xlu1 %346  ;;  %v345_v3 = vpop.permute.xlu0 %344  ;;  %v413_v4 = vmul.f32 %v1007_v51, %v865_v11  ;;  %v412_v18 = vmul.f32 %v1009_v52, %v861_v9  ;;  %v1368_v45 = vld [vmem:[#allocation18_spill] sm:$0xff]  ;;  %v1369_v29 = vld [vmem:[#allocation19_spill] sm:$0xff]  ;;  %v1370_v47 = vld [vmem:[#allocation20_spill] sm:$0xff] }
 0x107   :  { %v439_v19 = vmul.f32 %v347_v2, %v1097_v0  ;;  %v438_v62 = vmul.f32 %v345_v3, %v1079_v24  ;;  %v415_v35 = vmul.f32 %v1015_v53, %v863_v10  ;;  %v414_v51 = vmul.f32 %v1017_v54, %v859_v8  ;;  %v1371_v56 = vld [vmem:[#allocation21_spill] sm:$0xff]  ;;  %v1373_v2 = vld [vmem:[#allocation23_spill] sm:$0xff]  ;;  %s726_s4 = smov [#allocation11]  }
 0x108   :  { %501 = vst [vmem:[#allocation11 + $0x8] sm:$0xff] %v469_v50  ;;  %500 = vst [vmem:[#allocation11] sm:$0xff] %v468_v39  ;;  %v417_v1 = vmul.f32 %v1368_v45, %v865_v11  ;;  %v416_v36 = vmul.f32 %v1369_v29, %v861_v9  ;;  %v419_v13 = vmul.f32 %v1370_v47, %v863_v10  ;;  %v1372_v50 = vld [vmem:[#allocation22_spill] sm:$0xff]  ;;  %s549_s29 = sshll.u32 %s726_s4, 4  ;;  %s550_s29 = int_to_ptr.vmem [resolvable:$true] %s549_s29 }
 0x109   :  { %v471_v40 = vadd.f32 %v439_v19, %v883_v16  ;;  %v470_v32 = vadd.f32 %v438_v62, %v888_v21  ;;  %v418_v30 = vmul.f32 %v1371_v56, %v859_v8  ;;  %v421_v39 = vmul.f32 %v1372_v50, %v865_v11  ;;  %s686_s0 = scalar_lea.vmem %s550_s29, 4096  ;;  %p691_p13 = scmp.lt.s32.totalorder %s550_s29, %s550_s29 }
 0x10a   :  { %v351_v12 = vpop.permute.xlu1 %350  ;;  %v349_v41 = vpop.permute.xlu0 %348  ;;  %v420_v3 = vmul.f32 %v1373_v2, %v861_v9  ;;  %p687_p12 = scmp.ne.s32.totalorder %s550_s29, %s686_s0  ;;  %p692_p0 = scmp.lt.s32.totalorder %s686_s0, %s686_s0 }
 0x10b   :  { %503 = vst [vmem:[#allocation11 + $0x18] sm:$0xff] %v471_v40  ;;  %502 = vst [vmem:[#allocation11 + $0x10] sm:$0xff] %v470_v32  ;;  %v441_v55 = vmul.f32 %v351_v12, %v1099_v60  ;;  %v440_v15 = vmul.f32 %v349_v41, %v1081_v25 }
 0x10c   :  { %p693_p1 = por %p692_p0, %p691_p13 }
 0x10d   :  { %v473_v33 = vadd.f32 %v441_v55, %v891_v22  ;;  %v472_v59 = vadd.f32 %v440_v15, %v894_v23  ;;  %v1374_v55 = vld [vmem:[#allocation24_spill] sm:$0xff] }
 0x10e   :  { %v355_v20 = vpop.permute.xlu1 %354  ;;  %v353_v42 = vpop.permute.xlu0 %352  ;;  %v423_v15 = vmul.f32 %v1374_v55, %v863_v10  ;;  %p694_p2 = pnand %p693_p1, %p687_p12 }
 0x10f   :  { %505 = vst [vmem:[#allocation11 + $0x28] sm:$0xff] %v473_v33  ;;  %504 = vst [vmem:[#allocation11 + $0x20] sm:$0xff] %v472_v59  ;;  %v443_v16 = vmul.f32 %v355_v20, %v1097_v0  ;;  %v442_v21 = vmul.f32 %v353_v42, %v1079_v24  ;;  %v1375_v33 = vld [vmem:[#allocation25_spill] sm:$0xff] }
 0x110   :  { %v422_v59 = vmul.f32 %v1375_v33, %v859_v8 }
 0x111   :  { %v475_v43 = vadd.f32 %v443_v16, %v897_v26  ;;  %v474_v22 = vadd.f32 %v442_v21, %v900_v27 }
 0x112   :  { %v359_v34 = vpop.permute.xlu1 %358  ;;  %v357_v23 = vpop.permute.xlu0 %356 }
 0x113   :  { %507 = vst [vmem:[#allocation11 + $0x38] sm:$0xff] %v475_v43  ;;  %506 = vst [vmem:[#allocation11 + $0x30] sm:$0xff] %v474_v22  ;;  %v445_v58 = vmul.f32 %v359_v34, %v1099_v60  ;;  %v444_v5 = vmul.f32 %v357_v23, %v1081_v25  ;;  %v1376_v43 = vld [vmem:[#allocation26_spill] sm:$0xff]  ;;  %v1377_v34 = vld [vmem:[#allocation27_spill] sm:$0xff] }
 0x114   :  { %v425_v22 = vmul.f32 %v1376_v43, %v865_v11  ;;  %v424_v23 = vmul.f32 %v1377_v34, %v861_v9 }
 0x115   :  { %v477_v44 = vadd.f32 %v445_v58, %v413_v4  ;;  %v476_v52 = vadd.f32 %v444_v5, %v412_v18 }
 0x116   :  { %v363_v28 = vpop.permute.xlu1 %362  ;;  %v361_v26 = vpop.permute.xlu0 %360 }
 0x117   :  { %509 = vst [vmem:[#allocation11 + $0x48] sm:$0xff] %v477_v44  ;;  %508 = vst [vmem:[#allocation11 + $0x40] sm:$0xff] %v476_v52  ;;  %v447_v27 = vmul.f32 %v363_v28, %v1097_v0  ;;  %v446_v63 = vmul.f32 %v361_v26, %v1079_v24  ;;  %v1378_v28 = vld [vmem:[#allocation28_spill] sm:$0xff] }
 0x118   :  { %v427_v26 = vmul.f32 %v1378_v28, %v863_v10 }
 0x119   :  { %v479_v53 = vadd.f32 %v447_v27, %v415_v35  ;;  %v478_v14 = vadd.f32 %v446_v63, %v414_v51  ;;  %v1379_v27 = vld [vmem:[#allocation29_spill] sm:$0xff] }
 0x11a   :  { %v367_v46 = vpop.permute.xlu1 %366  ;;  %v365_v54 = vpop.permute.xlu0 %364  ;;  %v426_v63 = vmul.f32 %v1379_v27, %v859_v8 }
 0x11b   :  { %511 = vst [vmem:[#allocation11 + $0x58] sm:$0xff] %v479_v53  ;;  %510 = vst [vmem:[#allocation11 + $0x50] sm:$0xff] %v478_v14  ;;  %v449_v17 = vmul.f32 %v367_v46, %v1099_v60  ;;  %v448_v37 = vmul.f32 %v365_v54, %v1081_v25  ;;  %v1380_v46 = vld [vmem:[#allocation30_spill] sm:$0xff] }
 0x11c   :  { %v429_v54 = vmul.f32 %v1380_v46, %v865_v11 }
 0x11d   :  { %v481_v6 = vadd.f32 %v449_v17, %v417_v1  ;;  %v480_v48 = vadd.f32 %v448_v37, %v416_v36  ;;  %v1381_v17 = vld [vmem:[#allocation31_spill] sm:$0xff] }
 0x11e   :  { %v371_v38 = vpop.permute.xlu1 %370  ;;  %v369_v49 = vpop.permute.xlu0 %368  ;;  %v428_v37 = vmul.f32 %v1381_v17, %v861_v9 }
 0x11f   :  { %513 = vst [vmem:[#allocation11 + $0x68] sm:$0xff] %v481_v6  ;;  %512 = vst [vmem:[#allocation11 + $0x60] sm:$0xff] %v480_v48  ;;  %v451_v7 = vmul.f32 %v371_v38, %v1097_v0  ;;  %v450_v31 = vmul.f32 %v369_v49, %v1079_v24  ;;  %v1382_v38 = vld [vmem:[#allocation32_spill] sm:$0xff] }
 0x120   :  { %v431_v49 = vmul.f32 %v1382_v38, %v863_v10 }
 0x121   :  { %v483_v19 = vadd.f32 %v451_v7, %v419_v13  ;;  %v482_v62 = vadd.f32 %v450_v31, %v418_v30  ;;  %v1383_v7 = vld [vmem:[#allocation33_spill] sm:$0xff] }
 0x122   :  { %v375_v40 = vpop.permute.xlu1 %374  ;;  %v373_v32 = vpop.permute.xlu0 %372  ;;  %v430_v31 = vmul.f32 %v1383_v7, %v859_v8 }
 0x123   :  { %515 = vst [vmem:[#allocation11 + $0x78] sm:$0xff] %v483_v19  ;;  %514 = vst [vmem:[#allocation11 + $0x70] sm:$0xff] %v482_v62  ;;  %v453_v12 = vmul.f32 %v375_v40, %v1099_v60  ;;  %v452_v41 = vmul.f32 %v373_v32, %v1081_v25  ;;  %v433_v40 = vmul.f32 %v1105_v57, %v865_v11 }
 0x124   :  { %v432_v32 = vmul.f32 %v1107_v61, %v861_v9 }
 0x125   :  { %v485_v20 = vadd.f32 %v453_v12, %v421_v39  ;;  %v484_v42 = vadd.f32 %v452_v41, %v420_v3 }
 0x126   :  { %v379_v16 = vpop.permute.xlu1 %378  ;;  %v377_v21 = vpop.permute.xlu0 %376 }
 0x127   :  { %517 = vst [vmem:[#allocation11 + $0x88] sm:$0xff] %v485_v20  ;;  %516 = vst [vmem:[#allocation11 + $0x80] sm:$0xff] %v484_v42  ;;  %v455_v4 = vmul.f32 %v379_v16, %v1097_v0  ;;  %v454_v18 = vmul.f32 %v377_v21, %v1079_v24  ;;  %v1384_v20 = vld [vmem:[#allocation34_spill] sm:$0xff]  ;;  %v1385_v16 = vld [vmem:[#allocation35_spill] sm:$0xff] }
 0x128   :  { %v435_v42 = vmul.f32 %v1384_v20, %v863_v10  ;;  %v434_v21 = vmul.f32 %v1385_v16, %v859_v8 }
 0x129   :  { %v487_v58 = vadd.f32 %v455_v4, %v423_v15  ;;  %v486_v5 = vadd.f32 %v454_v18, %v422_v59 }
 0x12a   :  { %v383_v35 = vpop.permute.xlu1 %382  ;;  %v381_v51 = vpop.permute.xlu0 %380 }
 0x12b   :  { %519 = vst [vmem:[#allocation11 + $0x98] sm:$0xff] %v487_v58  ;;  %518 = vst [vmem:[#allocation11 + $0x90] sm:$0xff] %v486_v5  ;;  %v457_v44 = vmul.f32 %v383_v35, %v1099_v60  ;;  %v456_v52 = vmul.f32 %v381_v51, %v1081_v25 }
 0x12d   :  { %v489_v45 = vadd.f32 %v457_v44, %v425_v22  ;;  %v488_v1 = vadd.f32 %v456_v52, %v424_v23 }
 0x12e   :  { %v387_v29 = vpop.permute.xlu1 %386  ;;  %v385_v36 = vpop.permute.xlu0 %384 }
 0x12f   :  { %521 = vst [vmem:[#allocation11 + $0xa8] sm:$0xff] %v489_v45  ;;  %520 = vst [vmem:[#allocation11 + $0xa0] sm:$0xff] %v488_v1  ;;  %v459_v53 = vmul.f32 %v387_v29, %v1097_v0  ;;  %v458_v14 = vmul.f32 %v385_v36, %v1079_v24 }
 0x131   :  { %v491_v47 = vadd.f32 %v459_v53, %v427_v26  ;;  %v490_v13 = vadd.f32 %v458_v14, %v426_v63 }
 0x132   :  { %v391_v56 = vpop.permute.xlu1 %390  ;;  %v389_v30 = vpop.permute.xlu0 %388 }
 0x133   :  { %523 = vst [vmem:[#allocation11 + $0xb8] sm:$0xff] %v491_v47  ;;  %522 = vst [vmem:[#allocation11 + $0xb0] sm:$0xff] %v490_v13  ;;  %v461_v6 = vmul.f32 %v391_v56, %v1099_v60  ;;  %v460_v48 = vmul.f32 %v389_v30, %v1081_v25 }
 0x135   :  { %v493_v50 = vadd.f32 %v461_v6, %v429_v54  ;;  %v492_v39 = vadd.f32 %v460_v48, %v428_v37 }
 0x136   :  { %v395_v2 = vpop.permute.xlu1 %394  ;;  %v393_v3 = vpop.permute.xlu0 %392 }
 0x137   :  { %525 = vst [vmem:[#allocation11 + $0xc8] sm:$0xff] %v493_v50  ;;  %524 = vst [vmem:[#allocation11 + $0xc0] sm:$0xff] %v492_v39  ;;  %v463_v19 = vmul.f32 %v395_v2, %v1097_v0  ;;  %v462_v62 = vmul.f32 %v393_v3, %v1079_v24 }
 0x139   :  { %v495_v12 = vadd.f32 %v463_v19, %v431_v49  ;;  %v494_v41 = vadd.f32 %v462_v62, %v430_v31 }
 0x13a   :  { %v399_v55 = vpop.permute.xlu1 %398  ;;  %v397_v15 = vpop.permute.xlu0 %396 }
 0x13b   :  { %527 = vst [vmem:[#allocation11 + $0xd8] sm:$0xff] %v495_v12  ;;  %526 = vst [vmem:[#allocation11 + $0xd0] sm:$0xff] %v494_v41  ;;  %v465_v33 = vmul.f32 %v399_v55, %v1099_v60  ;;  %v464_v59 = vmul.f32 %v397_v15, %v1081_v25 }
 0x13d   :  { %v497_v11 = vadd.f32 %v465_v33, %v433_v40  ;;  %v496_v57 = vadd.f32 %v464_v59, %v432_v32 }
 0x13e   :  { %v403_v4 = vpop.permute.xlu1 %402  ;;  %v401_v9 = vpop.permute.xlu0 %400 }
 0x13f   :  { %529 = vst [vmem:[#allocation11 + $0xe8] sm:$0xff] %v497_v11  ;;  %528 = vst [vmem:[#allocation11 + $0xe0] sm:$0xff] %v496_v57  ;;  %v467_v61 = vmul.f32 %v403_v4, %v1097_v0  ;;  %v466_v60 = vmul.f32 %v401_v9, %v1079_v24 }
 0x141   :  { %v499_v18 = vadd.f32 %v467_v61, %v435_v42  ;;  %v498_v25 = vadd.f32 %v466_v60, %v434_v21 }
 0x143   :  { %531 = vst [vmem:[#allocation11 + $0xf8] sm:$0xff] %v499_v18  ;;  %530 = vst [vmem:[#allocation11 + $0xf0] sm:$0xff] %v498_v25 }
 0x144   :  { %697 = shalt.err (!%p694_p2)
}
 0x145   :  { %s698_s8 = scalar_lea.hbm %s1331_s5, 4096 }
 0x146   :  { %p699_p3 = scmp.ne.s32.totalorder %s1331_s5, %s698_s8  ;;  %p702_p4 = scmp.lt.u32.totalorder %s698_s8, %s1331_s5 }
 0x148   :  { %p704_p5 = pnand %p702_p4, %p699_p3 }
 0x14a   :  { %707 = shalt.err (!%p704_p5)
}
 0x14b   :  { %555 = dma.vmem_to_hbm [thread:$0]  %s550_s29, 4096, %s1331_s5, [#allocation12], %s720_s30, %s720_s30, %s721_s6  }
 0x14c   :  { %714 = dma.done.wait [#allocation4], 4096  }
 0x14d   :  { %715 = vsyncadd [#allocation4], 4294963200 }
 0x14e   :  { %716 = dma.done.wait [#allocation12], 4096  }
 0x14f   :  { %717 = vsyncadd [#allocation12], 4294963200 }
 0x150   :  { %562 = vsyncpa [#allocation3], 1 }
 0x151   :  { %563 = vsyncpa [#allocation6], 1 }
 0x152   :  { %564 = vsyncpa [#allocation9], 1 }
 0x153   :  { %565 = vsyncpa [#allocation4], 1 }
 0x154   :  { %566 = vsyncpa [#allocation12], 1 }

</bundles_post_ra>
